<compile_context>
chip_gen: v5e
topology: v5e:2x2
jax: 0.10.0
libtpu: 0.0.40
codegen_flags: <defaults>
</compile_context>

<pallas_src>
import functools

import jax
import jax.numpy as jnp
from jax.experimental import pallas as pl
from jax.experimental.pallas import tpu as pltpu

_LANE = 128                 # lane width = halo width = minimum length tile
_DEFAULT_VMEM = 64 << 20    # v7x per-TensorCore VMEM (most constrained chip)


def _round_up(x, m):
    return ((x + m - 1) // m) * m


def _cdiv(a, b):
    return -(-a // b)


def _vmem_capacity_bytes():
    """Physical VMEM of the attached TPU; conservative v7x fallback."""
    try:
        info = pltpu.get_tpu_info()
        for name in ("vmem_capacity_bytes", "vmem_size_bytes", "vmem_bytes"):
            val = getattr(info, name, None)
            if val:
                return int(val)
    except Exception:
        pass
    return _DEFAULT_VMEM


def _resconv1d_kernel(xm_ref, xh_ref, w_ref, o_ref, tail_ref, *, K, pad, HL):
    """One (batch, length-tile) step.  Channels on sublanes, length on lanes.

    xm_ref:   (1, C, TL)   main window of the left-zero-padded input
    xh_ref:   (1, C, HL)   halo = first HL columns of the next tile
    w_ref:    (K, C_out, C_in)
    o_ref:    (1, C_out, TL)
    tail_ref: (C, 2*HL)    scratch stitching tile tail + halo (tiny)
    """
    TL = o_ref.shape[2]
    TB = TL - HL  # "bulk" columns: everything they need lives inside xm_ref

    # ---- bulk: output columns [0, TB) — taps & residual straight from xm_ref.
    if TB > 0:
        acc = jnp.dot(w_ref[0], xm_ref[0, :, 0:TB],
                      preferred_element_type=jnp.float32)
        for k in range(1, K):  # K is tiny & static -> unrolled MXU dots
            acc = acc + jnp.dot(w_ref[k], xm_ref[0, :, k:k + TB],
                                preferred_element_type=jnp.float32)
        res = xm_ref[0, :, pad:pad + TB].astype(jnp.float32)
        o_ref[0, :, 0:TB] = (res + jnp.maximum(acc, 0.0)).astype(o_ref.dtype)

    # ---- tail: last HL output columns need the halo; stitch only 2*HL cols.
    tail_ref[:, 0:HL] = xm_ref[0, :, TB:TL]
    tail_ref[:, HL:2 * HL] = xh_ref[0]
    acc_t = jnp.dot(w_ref[0], tail_ref[:, 0:HL],
                    preferred_element_type=jnp.float32)
    for k in range(1, K):
        acc_t = acc_t + jnp.dot(w_ref[k], tail_ref[:, k:k + HL],
                                preferred_element_type=jnp.float32)
    res_t = tail_ref[:, pad:pad + HL].astype(jnp.float32)
    o_ref[0, :, TB:TL] = (res_t + jnp.maximum(acc_t, 0.0)).astype(o_ref.dtype)


def res_conv1d(x_ncl, weight, padding, max_tile_cols=None):
    """x_ncl: (N, C, L); weight: (C_out, C_in, K) as nn.Conv1d. Returns (N, C, L)."""
    N, C, L = x_ncl.shape
    C_out, C_in, K = weight.shape
    assert C_out == C and C_in == C, "residual add requires C_out == C_in == C"
    assert 2 * padding == K - 1, "residual add requires 'same' output length"
    HL = _LANE
    assert K - 1 <= HL and padding <= HL, "kernel width must fit the 128-lane halo"

    dtype = x_ncl.dtype
    bpe = jnp.dtype(dtype).itemsize

    # ---- generation-aware VMEM budget & tile-length selection ---------------
    vmem_cap = _vmem_capacity_bytes()
    vmem_limit = max(32 << 20, min(int(0.72 * vmem_cap), vmem_cap - (8 << 20)))
    budget = int(0.55 * vmem_limit)  # pipeline buffers + in-kernel temporaries
    # Bytes per length-column: double-buffered (in + out) tiles, f32 accumulator
    # and ~K shifted-operand temporaries, all at the real itemsize.
    per_col = 4 * C * bpe + 4 * C + min(K, 4) * C * bpe
    fixed = 2 * C * HL * bpe + 2 * K * C_out * C_in * bpe + 2 * C * 2 * HL * bpe
    cap = min(_round_up(L, HL), 8192)
    if max_tile_cols is not None:
        cap = min(cap, max(HL, _round_up(max_tile_cols, HL)))
    TL = max(HL, min(cap, ((budget - fixed) // max(per_col, 1)) // HL * HL))
    # Keep >= 2 grid steps when possible so the ("parallel","parallel") grid can
    # use both TensorCores on v7x even at N == 1.
    while N * _cdiv(L, TL) < 2 and TL > HL:
        TL = max(HL, _round_up(TL // 2, HL))
    Ltiles = _cdiv(L, TL)
    Lt = Ltiles * TL

    # ---- the only wrapper layout op: zero-pad along L (native NCL layout) ---
    P = Lt + HL
    xp = jnp.pad(x_ncl, ((0, 0), (0, 0), (padding, P - padding - L)))
    w_t = jnp.transpose(weight, (2, 0, 1))  # (K, C_out, C_in) — tiny

    kernel = functools.partial(_resconv1d_kernel, K=K, pad=padding, HL=HL)
    out_full = pl.pallas_call(
        kernel,
        out_shape=jax.ShapeDtypeStruct((N, C_out, Lt), dtype),
        grid_spec=pltpu.PrefetchScalarGridSpec(
            num_scalar_prefetch=0,
            grid=(N, Ltiles),
            in_specs=[
                # main (C, TL) window of the padded input for this tile
                pl.BlockSpec((1, C, TL), lambda n, j: (n, 0, j)),
                # HL-column halo: the first HL columns of the *next* tile
                pl.BlockSpec((1, C, HL),
                             lambda n, j: (n, 0, (j + 1) * (TL // HL))),
                # full weight tensor, resident across the grid
                pl.BlockSpec((K, C_out, C_in), lambda n, j: (0, 0, 0)),
            ],
            out_specs=pl.BlockSpec((1, C_out, TL), lambda n, j: (n, 0, j)),
            scratch_shapes=[pltpu.VMEM((C, 2 * HL), dtype)],
        ),
        compiler_params=pltpu.CompilerParams(
            dimension_semantics=("parallel", "parallel"),
            vmem_limit_bytes=int(vmem_limit),
        ),
    )(xp, xp, w_t)

    return out_full if Lt == L else out_full[:, :, :L]


def _reference(x_ncl, weight, padding):
    """Pure-JAX reference matching PyTorch Conv1d(bias=False) + ReLU + residual."""
    N, C, L = x_ncl.shape
    C_out, C_in, K = weight.shape
    xpad = jnp.pad(x_ncl, ((0, 0), (0, 0), (padding, padding)))
    windows = jnp.stack([xpad[:, :, k:k + L] for k in range(K)], axis=-1)  # (N,C,L,K)
    y = jnp.einsum("nclk,ock->nol", windows, weight)
    return x_ncl + jnp.maximum(y, 0.0)


if __name__ == "__main__":
    key = jax.random.PRNGKey(0)
    kx, kw, kx2, kw2 = jax.random.split(key, 4)

    f = jax.jit(res_conv1d, static_argnames=("padding", "max_tile_cols"))

    # --- test 1: small f32 shapes matching the module demo --------------------
    N, C, L, K, PAD = 2, 8, 16, 3, 1
    x = jax.random.normal(kx, (N, C, L), dtype=jnp.float32)
    weight = jax.random.normal(kw, (C, C, K), dtype=jnp.float32) * 0.2

    out = jax.block_until_ready(f(x, weight, padding=PAD))
    ref = _reference(x, weight, PAD)
    assert out.shape == (N, C, L) and out.dtype == x.dtype
    assert jnp.allclose(out, ref, atol=1e-5, rtol=1e-5)

    # --- test 2: lane-dense channels, multi-tile length, bf16 I/O -------------
    N2, C2, L2, K2, PAD2 = 2, 128, 3072, 5, 2
    x2 = jax.random.normal(kx2, (N2, C2, L2), dtype=jnp.float32)
    w2 = jax.random.normal(kw2, (C2, C2, K2), dtype=jnp.float32) * 0.2
    x2b, w2b = x2.astype(jnp.bfloat16), w2.astype(jnp.bfloat16)

    out2 = jax.block_until_ready(f(x2b, w2b, padding=PAD2, max_tile_cols=1024))
    ref2 = _reference(x2b.astype(jnp.float32), w2b.astype(jnp.float32), PAD2)
    assert out2.shape == (N2, C2, L2) and out2.dtype == jnp.bfloat16
    assert jnp.allclose(out2.astype(jnp.float32), ref2, atol=1e-1, rtol=2e-2)

    print("KERNEL_OK")
</pallas_src>

<mosaic_0001>
module attributes {stable_mosaic.version = 11 : i64} {
  func.func @_resconv1d_kernel(%arg0: i32, %arg1: i32, %arg2: memref<1x8x128xf32, #tpu.memory_space<vmem>>, %arg3: memref<1x8x128xf32, #tpu.memory_space<vmem>>, %arg4: memref<3x8x8xf32, #tpu.memory_space<vmem>>, %arg5: memref<1x8x128xf32, #tpu.memory_space<vmem>>, %arg6: memref<8x256xf32, #tpu.memory_space<vmem>>) attributes {dimension_semantics = [#tpu.dimension_semantics<parallel>, #tpu.dimension_semantics<parallel>], iteration_bounds = array<i64: 2, 1>, scalar_prefetch = 0 : i64, scratch_operands = 1 : i64, tpu.core_type = #tpu.core_type<tc>, window_params = [{transform_indices = @transform_0, window_bounds = array<i64: 1, 8, 128>}, {transform_indices = @transform_1, window_bounds = array<i64: 1, 8, 128>}, {pipeline_mode = #tpu.pipeline_mode<synchronous>, transform_indices = @transform_2, window_bounds = array<i64: 3, 8, 8>}, {transform_indices = @transform_3, window_bounds = array<i64: 1, 8, 128>}]} {
    %c0 = arith.constant 0 : index
    %c0_0 = arith.constant 0 : index
    %c0_1 = arith.constant 0 : index
    %0 = vector.load %arg2[%c0, %c0_0, %c0_1] : memref<1x8x128xf32, #tpu.memory_space<vmem>>, vector<1x8x128xf32>
    %1 = vector.shape_cast %0 : vector<1x8x128xf32> to vector<8x128xf32>
    %c0_2 = arith.constant 0 : index
    %c0_3 = arith.constant 0 : index
    %2 = vector.load %arg6[%c0_2, %c0_3] : memref<8x256xf32, #tpu.memory_space<vmem>>, vector<8x128xf32>
    tpu.vector_store %arg6[%c0_2, %c0_3], %1 {strides = array<i32>} : memref<8x256xf32, #tpu.memory_space<vmem>>, vector<8x128xf32>,
    %c0_4 = arith.constant 0 : index
    %c0_5 = arith.constant 0 : index
    %c0_6 = arith.constant 0 : index
    %3 = vector.load %arg3[%c0_4, %c0_5, %c0_6] : memref<1x8x128xf32, #tpu.memory_space<vmem>>, vector<1x8x128xf32>
    %4 = vector.shape_cast %3 : vector<1x8x128xf32> to vector<8x128xf32>
    %c0_7 = arith.constant 0 : index
    %c128 = arith.constant 128 : index
    %5 = vector.load %arg6[%c0_7, %c128] : memref<8x256xf32, #tpu.memory_space<vmem>>, vector<8x128xf32>
    tpu.vector_store %arg6[%c0_7, %c128], %4 {strides = array<i32>} : memref<8x256xf32, #tpu.memory_space<vmem>>, vector<8x128xf32>,
    %c0_8 = arith.constant 0 : index
    %c0_9 = arith.constant 0 : index
    %c0_10 = arith.constant 0 : index
    %6 = vector.load %arg4[%c0_8, %c0_9, %c0_10] : memref<3x8x8xf32, #tpu.memory_space<vmem>>, vector<1x8x8xf32>
    %7 = vector.shape_cast %6 : vector<1x8x8xf32> to vector<8x8xf32>
    %c0_11 = arith.constant 0 : index
    %c0_12 = arith.constant 0 : index
    %8 = vector.load %arg6[%c0_11, %c0_12] : memref<8x256xf32, #tpu.memory_space<vmem>>, vector<8x128xf32>
    %cst = arith.constant dense<0.000000e+00> : vector<8x128xf32>
    %9 = tpu.matmul %7, %8, %cst {dimension_numbers = #tpu.dot_dimension_numbers<[1], [0], [0], [1], [0, 0, 1, 1], [], []>} : vector<8x8xf32>, vector<8x128xf32>, vector<8x128xf32> -> vector<8x128xf32>
    %c1 = arith.constant 1 : index
    %c0_13 = arith.constant 0 : index
    %c0_14 = arith.constant 0 : index
    %10 = vector.load %arg4[%c1, %c0_13, %c0_14] : memref<3x8x8xf32, #tpu.memory_space<vmem>>, vector<1x8x8xf32>
    %11 = vector.shape_cast %10 : vector<1x8x8xf32> to vector<8x8xf32>
    %c0_15 = arith.constant 0 : index
    %c1_16 = arith.constant 1 : index
    %12 = vector.load %arg6[%c0_15, %c1_16] : memref<8x256xf32, #tpu.memory_space<vmem>>, vector<8x128xf32>
    %cst_17 = arith.constant dense<0.000000e+00> : vector<8x128xf32>
    %13 = tpu.matmul %11, %12, %cst_17 {dimension_numbers = #tpu.dot_dimension_numbers<[1], [0], [0], [1], [0, 0, 1, 1], [], []>} : vector<8x8xf32>, vector<8x128xf32>, vector<8x128xf32> -> vector<8x128xf32>
    %14 = arith.addf %9, %13 : vector<8x128xf32>
    %c2 = arith.constant 2 : index
    %c0_18 = arith.constant 0 : index
    %c0_19 = arith.constant 0 : index
    %15 = vector.load %arg4[%c2, %c0_18, %c0_19] : memref<3x8x8xf32, #tpu.memory_space<vmem>>, vector<1x8x8xf32>
    %16 = vector.shape_cast %15 : vector<1x8x8xf32> to vector<8x8xf32>
    %c0_20 = arith.constant 0 : index
    %c2_21 = arith.constant 2 : index
    %17 = vector.load %arg6[%c0_20, %c2_21] : memref<8x256xf32, #tpu.memory_space<vmem>>, vector<8x128xf32>
    %cst_22 = arith.constant dense<0.000000e+00> : vector<8x128xf32>
    %18 = tpu.matmul %16, %17, %cst_22 {dimension_numbers = #tpu.dot_dimension_numbers<[1], [0], [0], [1], [0, 0, 1, 1], [], []>} : vector<8x8xf32>, vector<8x128xf32>, vector<8x128xf32> -> vector<8x128xf32>
    %19 = arith.addf %14, %18 : vector<8x128xf32>
    %c0_23 = arith.constant 0 : index
    %c1_24 = arith.constant 1 : index
    %20 = vector.load %arg6[%c0_23, %c1_24] : memref<8x256xf32, #tpu.memory_space<vmem>>, vector<8x128xf32>
    %cst_25 = arith.constant 0.000000e+00 : f32
    %21 = vector.broadcast %cst_25 : f32 to vector<8x128xf32>
    %22 = arith.maximumf %19, %21 : vector<8x128xf32>
    %23 = arith.addf %20, %22 : vector<8x128xf32>
    %c0_26 = arith.constant 0 : index
    %c0_27 = arith.constant 0 : index
    %c0_28 = arith.constant 0 : index
    %24 = vector.load %arg5[%c0_26, %c0_27, %c0_28] : memref<1x8x128xf32, #tpu.memory_space<vmem>>, vector<1x8x128xf32>
    %25 = vector.shape_cast %24 : vector<1x8x128xf32> to vector<8x128xf32>
    %26 = vector.shape_cast %23 : vector<8x128xf32> to vector<1x8x128xf32>
    tpu.vector_store %arg5[%c0_26, %c0_27, %c0_28], %26 {strides = array<i32>} : memref<1x8x128xf32, #tpu.memory_space<vmem>>, vector<1x8x128xf32>,
    return
  }
  func.func @transform_0(%arg0: i32, %arg1: i32) -> (i32, i32, i32) {
    %c0_i32 = arith.constant 0 : i32
    %c0_i32_0 = arith.constant 0 : i32
    return %arg0, %c0_i32, %arg1 : i32, i32, i32
  }
  func.func @transform_1(%arg0: i32, %arg1: i32) -> (i32, i32, i32) {
    %c1_i32 = arith.constant 1 : i32
    %0 = arith.addi %arg1, %c1_i32 : i32
    %c1_i32_0 = arith.constant 1 : i32
    %1 = arith.muli %0, %c1_i32_0 : i32
    %c0_i32 = arith.constant 0 : i32
    %c0_i32_1 = arith.constant 0 : i32
    return %arg0, %c0_i32, %1 : i32, i32, i32
  }
  func.func @transform_2(%arg0: i32, %arg1: i32) -> (i32, i32, i32) {
    %c0_i32 = arith.constant 0 : i32
    %c0_i32_0 = arith.constant 0 : i32
    %c0_i32_1 = arith.constant 0 : i32
    %c0_i32_2 = arith.constant 0 : i32
    return %c0_i32, %c0_i32_0, %c0_i32_1 : i32, i32, i32
  }
  func.func @transform_3(%arg0: i32, %arg1: i32) -> (i32, i32, i32) {
    %c0_i32 = arith.constant 0 : i32
    %c0_i32_0 = arith.constant 0 : i32
    return %arg0, %c0_i32, %arg1 : i32, i32, i32
  }
}

</mosaic_0001>

<bundles_post_ra>
// kernel: res_conv1d.1
= control target key start
LH: loop header
LB: loop body
LE: loop exit
PB: predicated region body
PF: predicated region fallthrough
CT: control target
= control target key end

     0   :  { %8 = vsyncpa [#allocation4], 0  ;;  %s767_s0 = inlined_call_operand.vmem [shape: f32[2,8,256], index: 0, kind: input, shape index: {}, may-alias: {0,1}]   ;;  %s768_s1 = inlined_call_operand.vmem [shape: f32[2,8,256], index: 1, kind: input, shape index: {}, may-alias: {0,1}]   ;;  %s769_s2 = inlined_call_operand.vmem [shape: f32[3,8,8], index: 2, kind: input, shape index: {}]   ;;  %s770_s3 = inlined_call_operand.hbm [shape: f32[2,8,128], index: 3, kind: output, shape index: {}]  }
   0x1   :  { %10 = vsyncpa [#allocation4 + $0x1], 0  ;;  %s650_s12 = smov 0   ;;  %s652_s13 = smov 0  }
   0x2   :  { %s654_s14 = smov 0   ;;  %s656_s15 = smov 0  }
   0x3   :  { %s658_s16 = smov 0   ;;  %s660_s17 = smov 0  }
   0x4 LB: > { %s456_s18 = sadd.s32 4294967295, %s625_s17   ;;  %s457_s19 = sadd.s32 4294967294, %s625_s17   ;;  %s625_s17 = sphi %s660_s17, %s16_s17   ;;  %s621_s16 = sphi %s658_s16, %s777_s16   ;;  %s617_s15 = sphi %s656_s15, %s776_s15   ;;  %s613_s14 = sphi %s654_s14, %s775_s14   ;;  %s609_s13 = sphi %s652_s13, %s774_s13   ;;  %s605_s12 = sphi %s650_s12, %s773_s12  }
   0x5   : > { %s28_s20 = sadd.s32 1, %s621_s16  ;;  %s116_s21 = sadd.s32 1, %s613_s14 }
   0x6   : > { %p30_p0 = scmp.ge.s32.totalorder %s28_s20, 2  ;;  %p126_p1 = scmp.ne.s32.totalorder %s613_s14, %s609_s13 }
   0x7   : > { %p127_p2 = scmp.eq.s32.totalorder %s456_s18, 1  ;;  %p132_p3 = scmp.ne.s32.totalorder %s609_s13, %s605_s12 }
   0x8   : > { %s779_s20 = smov (%p30_p0, %s28_s20), 0  ;;  %p133_p5 = scmp.eq.s32.totalorder %s457_s19, 1 }
   0x9   : > { %p690_p4 = por %p127_p2, %p126_p1  ;;  %s111_s23 = ssub.s32 %s621_s16, %s779_s20 }
   0xa   : > { %p460_p6 = scmp.ge.s32.totalorder %s625_s17, 1  ;;  %p114_p7 = scmp.eq.s32.totalorder %s111_s23, 0 }
   0xb   : > { %p697_p8 = por %p133_p5, %p132_p3  ;;  %p178_p9 = scmp.lt.s32.totalorder %s625_s17, 3 }
   0xc   : > { %s703_s25 = scalar_select %p114_p7, %s613_s14, %s116_s21  }
   0xd   : > { %p179_p10 = pnand %p460_p6, %p178_p9 }
   0xe   : > { %p214_p11 = scmp.lt.s32.totalorder (!%p179_p10), %s617_s15, 1  ;;  %s627_s8 = smov (!%p179_p10), 126  }
   0xf   : > { %182 = sbr.rel (%p179_p10) target bundleno = 523 (0x20b), region = 32  ;;  %s628_s9 = smov (!%p179_p10), 127  }
  0x10   : > { %s472_s29 = sshll.u32 (!%p179_p10), %s617_s15, 3  ;;  %s567_s19 = scalar_lea.hbm (!%p179_p10), %s770_s3, 16 }
  0x11   : > { %s359_s5 = scalar_lea.hbm (!%p179_p10), %s770_s3, %s472_s29 }
  0x14   : > { %s215_s26 = scalar_select %p214_p11, %s617_s15, 1  ;;  %vm251_vm0 = vcmask 64512   ;;  %v236_v3 = vld [vmem:[%s769_s2] sm:$0xff]  ;;  %vm304_vm1 = vcmask 1031168   ;;  %v469_v7 = vld [vmem:[%s769_s2 + $0x10] sm:$0xff]  ;;  %vm248_vm2 = vcmask 1039360  }
  0x15   : > { %v466_v12 = vld [vmem:[%s769_s2 + $0x8] sm:$0xff] }
  0x16   : > { %s475_s27 = sshll.u32 %s215_s26, 4  ;;  %s629_s26 = smov 1  }
  0x17   : > { %s221_s30 = scalar_lea.vmem %s767_s0, %s475_s27  ;;  %s477_s4 = sadd.s32 8, %s475_s27 }
  0x18   : > { %s230_s7 = scalar_lea.vmem %s768_s1, %s477_s4  ;;  %v232_v0 = vld [vmem:[%s221_s30] sm:$0xff]  ;;  %s211_s27 = sand.u32 1, %s609_s13  }
  0x19   : > { %v234_v1 = vld [vmem:[%s230_s7] sm:$0xff]  ;;  %293 = vmatpush.msra.mxu1 %v232_v0  ;;  %s461_s28 = sshll.u32 %s211_s27, 3  ;;  %s348_s10 = scalar_lea.sflag [#allocation4], %s211_s27 }
  0x1a   : > { %v537_v2 = vpack.i.bf16 %v234_v1, %v232_v0  ;;  %468 = vmatmul.msk.f32.vlgmr.msra.gmra.mxu1 %vm251_vm0, %v236_v3  ;;  %s213_s6 = scalar_lea.vmem [#allocation3], %s461_s28 }
  0x1b   : > { %s361_s7 = sshll.u32 %s213_s6, 4  ;;  %s362_s7 = int_to_ptr.vmem [resolvable:$true] %s361_s7 }
  0x1c   : > { %538 = vrot.lane.b32.xlu0 %v537_v2, %s627_s8  ;;  %s363_s8 = sshll.u32 %s359_s5, 4  ;;  %s364_s8 = int_to_ptr.hbm [resolvable:$true] %s363_s8 }
  0x24   : > { %543 = vrot.lane.b32.xlu0 %v537_v2, %s628_s9 }
  0x8e   : > { %v539_v4 = vpop.permute.xlu0 %538 }
  0x8f   : > { %v541_v5 = vunpack.i.h.bf16 %v539_v4  ;;  %v540_v6 = vunpack.i.l.bf16 %v539_v4 }
  0x91   : > { %v305_v8 = vsel %vm304_vm1, %v540_v6, %v541_v5 }
  0x92   : > { %325 = vmatpush.msra.mxu2 %v305_v8 }
  0x93   : > { %470 = vmatmul.msk.f32.vlgmr.msra.gmra.mxu2 %vm251_vm0, %v469_v7 }
  0x96   : > { %v544_v9 = vpop.permute.xlu0 %543 }
  0x97   : > { %v546_v10 = vunpack.i.h.bf16 %v544_v9  ;;  %v545_v11 = vunpack.i.l.bf16 %v544_v9  ;;  %v295_v14 = vpop.f32.mrf.mxu1 }
  0x99   : > { %v249_v13 = vsel %vm248_vm2, %v545_v11, %v546_v10 }
  0x9a   : > { %270 = vmatpush.msra.mxu0 %v249_v13 }
  0x9b   : > { %467 = vmatmul.msk.f32.vlgmr.msra.gmra.mxu0 %vm251_vm0, %v466_v12 }
 0x116   : > { %v327_v16 = vpop.f32.mrf.mxu2 }
 0x118   : > { %v272_v15 = vpop.f32.mrf.mxu0 }
 0x119   : > { %v296_v17 = vadd.f32 %v295_v14, %v272_v15 }
 0x11b   : > { %v330_v18 = vadd.f32 %v327_v16, %v296_v17 }
 0x11d   : > { %v331_v19 = vmax.f32 %v330_v18, 0.0 }
 0x11f   : > { %333 = vrot.lane.b32.xlu1 %v331_v19, %s629_s26 }
 0x191   : > { %v334_v20 = vpop.permute.xlu1 %333 }
 0x192   : > { %v336_v21 = vadd.f32 %v334_v20, %v232_v0  ;;  %v337_v22 = vadd.f32 %v334_v20, %v234_v1 }
 0x194   : > { %342 = vrot.lane.b32.xlu2 %v337_v22, %s628_s9  ;;  %340 = vrot.lane.b32.xlu1 %v336_v21, %s628_s9  ;;  %s561_s9 = sshra.s32 %s364_s8, 4  ;;  %s562_s9 = int_to_ptr.hbm [resolvable:$true] %s561_s9 }
 0x195   : > { %s563_s11 = scalar_lea.hbm %s562_s9, 8  ;;  %p568_p1 = scmp.lt.s32.totalorder %s562_s9, %s770_s3 }
 0x196   : > { %p564_p12 = scmp.ne.s32.totalorder %s562_s9, %s563_s11  ;;  %p569_p2 = scmp.lt.s32.totalorder %s567_s19, %s563_s11 }
 0x198   : > { %p565_p13 = pnand %p564_p12, %p690_p4  ;;  %p570_p3 = por %p569_p2, %p568_p1 }
 0x19a   : > { %p566_p0 = pneg %p565_p13 }
 0x19c   : > { %p571_p5 = pnand %p570_p3, %p566_p0 }
 0x1ee   : > { %v343_v23 = vpop.permute.xlu2 %342 }
 0x206   : > { %v341_v24 = vpop.permute.xlu1 %340 }
 0x207   : > { %v344_v25 = vsel %vm248_vm2, %v341_v24, %v343_v23 }
 0x208   : > { %346 = vst [vmem:[%s213_s6] sm:$0xff] %v344_v25 }
 0x209   : > { %574 = shalt.err (!%p571_p5)
}
 0x20a   : > { %479 = dma.vmem_to_hbm [thread:$0]  (%p690_p4), %s362_s7, 128, %s364_s8, %s348_s10  }
 0x20b PF: > { %p485_p6 = scmp.ge.s32.totalorder %s625_s17, 2  ;;  %s375_s26 = sand.u32 1, %s605_s12  }
 0x20c   : > { %s376_s27 = scalar_lea.sflag [#allocation4], %s375_s26 }
 0x20d   : > { %p482_p7 = pnand %p485_p6, %p697_p8 }
 0x20f   : > { %p483_p9 = pneg %p482_p7 }
 0x211   : > { %600 = dma.done.wait (%p483_p9), %s376_s27, 128  }
 0x212   : > { %602 = vsyncadd (%p483_p9), %s376_s27, 4294967168  ;;  %s16_s17 = sadd.s32 1, %s625_s17   ;;  %s773_s12 = smov %s609_s13 }
 0x213   : > { %p13_p10 = scmp.ge.s32.totalorder %s16_s17, 4   ;;  %s774_s13 = smov %s613_s14 }
 0x214   : > { %s775_s14 = smov %s703_s25  ;;  %s776_s15 = smov %s621_s16 }
 0x215   : > { %s777_s16 = smov %s779_s20  ;;  %15 = sbr.rel (!%p13_p10) target bundleno = 4 (0x4), region = 72 }
 0x21a   :  { %382 = vsyncpa [#allocation4], 1 }
 0x21b   :  { %384 = vsyncpa [#allocation4 + $0x1], 1 }

</bundles_post_ra>
